<compile_context>
chip_gen: v6e
topology: v6e:2x2x1
jax: 0.10.0
libtpu: 0.0.40
codegen_flags: <defaults>
</compile_context>

<pallas_src>
import functools
import math

import jax
import jax.numpy as jnp
from jax import lax
from jax.experimental import pallas as pl
from jax.experimental.pallas import tpu as pltpu

_LANES = 128
_LANE_WIDTHS = (1024, 512, 256, 128)
_VALID_TYPES = (None, "relu", "sigmoid", "tanh", "gelu")


# --------------------------------------------------------------------------
# Kernel
# --------------------------------------------------------------------------
def _activation_kernel(x_ref, o_ref, *, activ_type, compute_dtype):
    x = x_ref[...]
    if activ_type == "relu":
        # Native-dtype relu: exact, no upcast.
        o_ref[...] = jnp.maximum(x, 0).astype(o_ref.dtype)
        return
    xc = x.astype(compute_dtype)
    if activ_type == "sigmoid":
        y = jax.nn.sigmoid(xc)
    elif activ_type == "tanh":
        y = jnp.tanh(xc)
    else:  # 'gelu' -- nn.GELU() default is the exact (erf-based) form.
        half = jnp.asarray(0.5, dtype=compute_dtype)
        one = jnp.asarray(1.0, dtype=compute_dtype)
        inv_sqrt2 = jnp.asarray(1.0 / math.sqrt(2.0), dtype=compute_dtype)
        y = half * xc * (one + lax.erf(xc * inv_sqrt2))
    o_ref[...] = y.astype(o_ref.dtype)


# --------------------------------------------------------------------------
# Generation-aware tuning
# --------------------------------------------------------------------------
def _chip_params():
    """Returns (target_block_bytes, min_grid_steps, bf16_native_compute)."""
    kind = ""
    try:
        kind = jax.devices()[0].device_kind.lower()
    except Exception:
        pass
    if "v7" in kind or "7x" in kind:
        # 64 MiB VMEM/TC, 2 TCs -> 4 MiB blocks, >=2 grid steps per core.
        return 4 * 1024 * 1024, 4, True
    if "v6" in kind or "6e" in kind:
        # 32 MiB scoped-VMEM default, bf16 VPU/EUP.
        return 4 * 1024 * 1024, 2, True
    # v5e / unknown: 16 MiB scoped-VMEM default, no bf16 VPU/EUP -> conservative.
    return 2 * 1024 * 1024, 2, False


def _sublane_pack(dtype):
    itemsize = jnp.dtype(dtype).itemsize
    return max(8, 32 // max(1, itemsize))  # 8/f32, 16/bf16, 32/i8


def _jnp_activation(x, activ_type):
    """Tiny plain-jnp path (tail elements / sub-128 inputs / reference)."""
    if activ_type is None:
        return x
    if activ_type == "relu":
        return jnp.maximum(x, 0)
    xf = x.astype(jnp.float32)
    if activ_type == "sigmoid":
        y = jax.nn.sigmoid(xf)
    elif activ_type == "tanh":
        y = jnp.tanh(xf)
    elif activ_type == "gelu":
        y = 0.5 * xf * (1.0 + lax.erf(xf * (1.0 / math.sqrt(2.0))))
    else:
        raise ValueError(activ_type)
    return y.astype(x.dtype)


# --------------------------------------------------------------------------
# Wrapper
# --------------------------------------------------------------------------
def activation(x, activ_type=None):
    """Pallas-backed equivalent of Activation(activ_type)(x). Elementwise, any shape."""
    if activ_type not in _VALID_TYPES:
        raise ValueError(
            'Invalid activation type "{activ_type}"'.format(activ_type=activ_type)
        )

    # Identity fast path: no kernel, no copies.
    if activ_type is None:
        return x

    orig_shape = x.shape
    dtype = x.dtype
    n = x.size
    if n == 0:
        return x

    block_bytes, min_steps, bf16_native = _chip_params()
    itemsize = jnp.dtype(dtype).itemsize
    sub = _sublane_pack(dtype)

    x_flat = jnp.ravel(x)  # free bitcast for a contiguous array

    # 128-aligned main slab; <128-element tail handled by plain jnp (no pad).
    n_main = (n // _LANES) * _LANES
    if n_main == 0:
        # Fewer than 128 elements: not worth a kernel launch.
        return _jnp_activation(x_flat, activ_type).reshape(orig_shape)

    # Widest lane-dense layout that divides the main slab (free bitcast;
    # longer unmasked vld/vst runs, fewer per-row loop iterations).
    width = _LANES
    for w in _LANE_WIDTHS:
        if n_main % w == 0:
            width = w
            break
    rows = n_main // width

    x_main = x_flat if n_main == n else x_flat[:n_main]
    x2d = x_main.reshape(rows, width)

    # Block sizing: ~block_bytes per block (generation-aware), rounded to the
    # dtype's sublane packing; keep >= min_steps grid steps when possible so
    # v7x's two TensorCores each double-buffer.
    target_rows = max(sub, (block_bytes // (width * itemsize)) // sub * sub)
    if rows <= sub:
        block_rows = rows  # full-extent block (allowed even when < 8 rows)
    else:
        per_step = pl.cdiv(pl.cdiv(rows, min_steps), sub) * sub
        block_rows = max(sub, min(target_rows, per_step))
    grid = (pl.cdiv(rows, block_rows),)

    # Compute dtype: relu is native; transcendental variants stay in bf16 on
    # chips with bf16 VPU/EUP (v6e/v7x), otherwise upcast to f32.
    if activ_type == "relu" or (bf16_native and dtype == jnp.bfloat16):
        compute_dtype = dtype
    else:
        compute_dtype = jnp.float32

    block_vmem = block_rows * width * itemsize
    vmem_limit = int(min(32 << 20, max(16 << 20, 4 * block_vmem + (2 << 20))))

    bytes_accessed = 2 * n_main * itemsize
    transcendentals = 0 if activ_type == "relu" else n_main
    flops = (1 if activ_type == "relu" else 6) * n_main

    kernel = functools.partial(
        _activation_kernel, activ_type=activ_type, compute_dtype=compute_dtype
    )

    y2d = pl.pallas_call(
        kernel,
        out_shape=jax.ShapeDtypeStruct((rows, width), dtype),
        grid=grid,
        in_specs=[pl.BlockSpec((block_rows, width), lambda i: (i, 0))],
        out_specs=pl.BlockSpec((block_rows, width), lambda i: (i, 0)),
        compiler_params=pltpu.CompilerParams(
            dimension_semantics=("parallel",),
            vmem_limit_bytes=vmem_limit,
        ),
        cost_estimate=pl.CostEstimate(
            flops=flops,
            transcendentals=transcendentals,
            bytes_accessed=bytes_accessed,
        ),
    )(x2d)

    y_main = y2d.reshape(-1)
    if n_main == n:
        return y_main.reshape(orig_shape)
    # Ragged tail (< 128 elements): tiny plain-jnp epilogue, no pad copy.
    y_tail = _jnp_activation(x_flat[n_main:], activ_type)
    return jnp.concatenate([y_main, y_tail]).reshape(orig_shape)


class Activation:
    """Drop-in analogue of the PyTorch module."""

    def __init__(self, activ_type=None):
        if activ_type not in _VALID_TYPES:
            raise ValueError(
                'Invalid activation type "{activ_type}"'.format(activ_type=activ_type)
            )
        self.activ_type = activ_type

    def __call__(self, x):
        return activation(x, self.activ_type)


# --------------------------------------------------------------------------
# Self-test
# --------------------------------------------------------------------------
if __name__ == "__main__":
    key = jax.random.PRNGKey(0)
    k0, k1, k2, k3 = jax.random.split(key, 4)

    ok = True

    # Typical aligned NCHW conv activation input (f32).
    x = jax.random.normal(k0, (2, 4, 16, 16), dtype=jnp.float32)
    for activ_type in (None, "relu", "sigmoid", "tanh", "gelu"):
        y = jax.block_until_ready(activation(x, activ_type))
        ref = _jnp_activation(x, activ_type)
        if y.shape != x.shape or y.dtype != x.dtype:
            ok = False
            break
        if not jnp.allclose(y, ref, atol=1e-5, rtol=1e-5):
            ok = False
            break

    # Moderately sized f32: multi-block grid path.
    if ok:
        x_m = jax.random.normal(k1, (8, 64, 64), dtype=jnp.float32)
        for activ_type in ("relu", "gelu"):
            y = jax.block_until_ready(activation(x_m, activ_type))
            ref = _jnp_activation(x_m, activ_type)
            if y.shape != x_m.shape or not jnp.allclose(y, ref, atol=1e-5, rtol=1e-5):
                ok = False
                break

    # Truly unaligned size: aligned-prefix kernel + jnp tail (+ ragged grid).
    if ok:
        x_u = jax.random.normal(k2, (3, 5, 7, 11), dtype=jnp.float32)  # 1155 elems
        for activ_type in ("relu", "sigmoid", "gelu"):
            y = jax.block_until_ready(activation(x_u, activ_type))
            ref = _jnp_activation(x_u, activ_type)
            if y.shape != x_u.shape or not jnp.allclose(y, ref, atol=1e-5, rtol=1e-5):
                ok = False
                break

    # Tiny input (< 128 elems): pure-jnp fallback path.
    if ok:
        x_t = jax.random.normal(k3, (2, 3, 5), dtype=jnp.float32)
        y = jax.block_until_ready(activation(x_t, "tanh"))
        ref = _jnp_activation(x_t, "tanh")
        if y.shape != x_t.shape or not jnp.allclose(y, ref, atol=1e-5, rtol=1e-5):
            ok = False

    # bf16: native-dtype relu (exact) and bf16-compute transcendentals
    # (looser tolerance vs. the f32-computed reference).
    if ok:
        x_b = x.astype(jnp.bfloat16)
        y = jax.block_until_ready(activation(x_b, "relu"))
        if y.dtype != jnp.bfloat16 or not jnp.array_equal(y, jnp.maximum(x_b, 0)):
            ok = False
        if ok:
            for activ_type in ("sigmoid", "tanh", "gelu"):
                y = jax.block_until_ready(activation(x_b, activ_type))
                ref = _jnp_activation(x_b, activ_type)
                if y.dtype != jnp.bfloat16 or not jnp.allclose(
                    y.astype(jnp.float32), ref.astype(jnp.float32), atol=5e-2
                ):
                    ok = False
                    break

    print("KERNEL_OK" if ok else "KERNEL_MISMATCH")
</pallas_src>

<mosaic_0001>
module attributes {stable_mosaic.version = 11 : i64} {
  func.func @_activation_kernel(%arg0: i32, %arg1: memref<2x1024xf32, #tpu.memory_space<vmem>>, %arg2: memref<2x1024xf32, #tpu.memory_space<vmem>>) attributes {dimension_semantics = [#tpu.dimension_semantics<parallel>], iteration_bounds = array<i64: 1>, scalar_prefetch = 0 : i64, scratch_operands = 0 : i64, tpu.core_type = #tpu.core_type<tc>, window_params = [{transform_indices = @transform_0, window_bounds = array<i64: 2, 1024>}, {transform_indices = @transform_1, window_bounds = array<i64: 2, 1024>}]} {
    %c0 = arith.constant 0 : index
    %c0_0 = arith.constant 0 : index
    %0 = vector.load %arg1[%c0, %c0_0] : memref<2x1024xf32, #tpu.memory_space<vmem>>, vector<2x1024xf32>
    %cst = arith.constant 0.000000e+00 : f32
    %1 = vector.broadcast %cst : f32 to vector<2x1024xf32>
    %2 = arith.maximumf %0, %1 : vector<2x1024xf32>
    %c0_1 = arith.constant 0 : index
    %c0_2 = arith.constant 0 : index
    %3 = vector.load %arg2[%c0_1, %c0_2] : memref<2x1024xf32, #tpu.memory_space<vmem>>, vector<2x1024xf32>
    tpu.vector_store %arg2[%c0_1, %c0_2], %2 {strides = array<i32>} : memref<2x1024xf32, #tpu.memory_space<vmem>>, vector<2x1024xf32>,
    return
  }
  func.func @transform_0(%arg0: i32) -> (i32, i32) {
    %c0_i32 = arith.constant 0 : i32
    %c0_i32_0 = arith.constant 0 : i32
    return %arg0, %c0_i32 : i32, i32
  }
  func.func @transform_1(%arg0: i32) -> (i32, i32) {
    %c0_i32 = arith.constant 0 : i32
    %c0_i32_0 = arith.constant 0 : i32
    return %arg0, %c0_i32 : i32, i32
  }
}

</mosaic_0001>

<bundles_post_ra>
// kernel: tpu_custom_call.1
= control target key start
LH: loop header
LB: loop body
LE: loop exit
PB: predicated region body
PF: predicated region fallthrough
CT: control target
= control target key end

     0   :  { %6 = vsyncpa [#allocation3], 0  ;;  %s106_s0 = inlined_call_operand.hbm [shape: f32[2,1024], index: 0, kind: input, shape index: {}]   ;;  %s107_s1 = inlined_call_operand.hbm [shape: f32[2,1024], index: 1, kind: output, shape index: {}]  }
   0x1   :  { %7 = vsyncpa [#allocation4], 0  ;;  %s88_s6 = smov [#allocation2]  }
   0x2   :  { %s14_s7 = sshll.u32 %s88_s6, 4  ;;  %s15_s7 = int_to_ptr.vmem [resolvable:$true] %s14_s7 }
   0x3   :  { %s52_s8 = scalar_lea.vmem %s15_s7, 256  ;;  %p57_p1 = scmp.lt.s32.totalorder %s15_s7, %s15_s7 }
   0x4   :  { %p53_p0 = scmp.ne.s32.totalorder %s15_s7, %s52_s8  ;;  %p58_p2 = scmp.lt.s32.totalorder %s52_s8, %s52_s8 }
   0x6   :  { %p59_p3 = por %p58_p2, %p57_p1 }
   0x8   :  { %p60_p4 = pnand %p59_p3, %p53_p0 }
   0xa   :  { %63 = shalt.err (!%p60_p4)
}
   0xb   :  { %17 = dma.hbm_to_vmem [thread:$0]  %s106_s0, 256, %s15_s7, [#allocation3]  }
   0xc   :  { %84 = dma.done.wait [#allocation3], 256  }
   0xd   :  { %85 = vsyncadd [#allocation3], 4294967040  ;;  %s89_s11 = smov [#allocation5]   ;;  %v21_v0 = vld [vmem:[#allocation2] sm:$0xff]  ;;  %v22_v1 = vld [vmem:[#allocation2 + $0x8] sm:$0xff] }
   0xe   :  { %s33_s12 = sshll.u32 %s89_s11, 4  ;;  %v23_v2 = vmax.f32 %v21_v0, 0.0  ;;  %v24_v3 = vmax.f32 %v22_v1, 0.0  ;;  %s34_s12 = int_to_ptr.vmem [resolvable:$true] %s33_s12 }
   0xf   :  { %s64_s13 = scalar_lea.vmem %s34_s12, 256  ;;  %p69_p6 = scmp.lt.s32.totalorder %s34_s12, %s34_s12 }
  0x10   :  { %25 = vst [vmem:[#allocation5] sm:$0xff] %v23_v2  ;;  %26 = vst [vmem:[#allocation5 + $0x8] sm:$0xff] %v24_v3  ;;  %p65_p5 = scmp.ne.s32.totalorder %s34_s12, %s64_s13  ;;  %p70_p7 = scmp.lt.s32.totalorder %s64_s13, %s64_s13 }
  0x12   :  { %p71_p8 = por %p70_p7, %p69_p6 }
  0x14   :  { %p72_p9 = pnand %p71_p8, %p65_p5 }
  0x16   :  { %75 = shalt.err (!%p72_p9)
}
  0x17   :  { %36 = dma.vmem_to_hbm [thread:$0]  %s34_s12, 256, %s107_s1, [#allocation4]  }
  0x18   :  { %86 = dma.done.wait [#allocation4], 256  }
  0x19   :  { %87 = vsyncadd [#allocation4], 4294967040 }
  0x1a   :  { %40 = vsyncpa [#allocation3], 1 }
  0x1b   :  { %41 = vsyncpa [#allocation4], 1 }

</bundles_post_ra>
